<compile_context>
chip_gen: v5e
topology: v5e:2x2
jax: 0.10.0
libtpu: 0.0.40
codegen_flags: <defaults>
</compile_context>

<pallas_src>
import inspect
import math

import jax
import jax.numpy as jnp
from jax.experimental import pallas as pl
from jax.experimental.pallas import tpu as pltpu

LANE = 128
SUBLANE = 8


def _round_up(a: int, b: int) -> int:
    return (a + b - 1) // b * b


def _buffered_supported() -> bool:
    """Is pipeline_mode=pl.Buffered(n) available in this jax version?"""
    if not hasattr(pl, "Buffered"):
        return False
    try:
        return "pipeline_mode" in inspect.signature(pl.BlockSpec).parameters
    except (TypeError, ValueError):
        return False


_HAS_BUFFERED = _buffered_supported()


def _vmem_capacity_bytes() -> int:
    """Physical VMEM per TensorCore; conservative 64 MiB (v7x) if query fails."""
    try:
        return int(pltpu.get_tpu_info().vmem_capacity_bytes)
    except Exception:
        return 64 << 20


# ---------------------------------------------------------------------------
# kernels
# ---------------------------------------------------------------------------
def _mlp_kernel(x_ref, w1_ref, b1_ref, w2_ref, b2_ref, o_ref):
    # Fused per-row-tile MLP: two bf16 MXU matmuls with f32 accumulation,
    # bias + ReLU in f32. Weights/biases are resident across the whole grid.
    x = x_ref[...].astype(jnp.bfloat16)                               # no-op if already bf16
    h = jnp.dot(x, w1_ref[...], preferred_element_type=jnp.float32)   # (tm, hid_p) f32
    h = jnp.maximum(h + b1_ref[...], 0.0).astype(jnp.bfloat16)        # bias + ReLU in f32
    o = jnp.dot(h, w2_ref[...], preferred_element_type=jnp.float32)   # (tm, out_p) f32
    o_ref[...] = (o + b2_ref[...]).astype(o_ref.dtype)


def _mlp_kernel_ktiled(x_ref, w1_ref, b1_ref, w2_ref, b2_ref, o_ref, acc_ref):
    # Hidden-dim tiled variant: per k-chunk  ReLU(x @ W1[:, k] + b1[k]) @ W2[k, :]
    # accumulated in f32 VMEM scratch. Exact: ReLU is elementwise over hid, the
    # second matmul sums over hid, so per-chunk ReLU + accumulation is identical.
    k = pl.program_id(1)

    @pl.when(k == 0)
    def _():
        acc_ref[...] = jnp.zeros_like(acc_ref)

    x = x_ref[...].astype(jnp.bfloat16)
    h = jnp.dot(x, w1_ref[...], preferred_element_type=jnp.float32)
    h = jnp.maximum(h + b1_ref[...], 0.0).astype(jnp.bfloat16)
    acc_ref[...] += jnp.dot(h, w2_ref[...], preferred_element_type=jnp.float32)

    @pl.when(k == pl.num_programs(1) - 1)
    def _():
        o_ref[...] = (acc_ref[...] + b2_ref[...]).astype(o_ref.dtype)


# ---------------------------------------------------------------------------
# wrapper
# ---------------------------------------------------------------------------
def prepare_params(w1, b1, w2, b2):
    """One-time lane-dense (128-multiple) padding + bf16 cast of the weights.

    w1: (in_dim, hid_dim), w2: (hid_dim, out_dim) stored in (in, out) layout
    (i.e. the transpose of torch's Linear.weight); biases (dim,) or (1, dim).
    Call once and reuse the returned params across forward calls so the
    pad/cast HBM traffic is NOT paid on every forward call.
    """
    in_dim, hid_dim = w1.shape
    out_dim = w2.shape[1]
    in_p, hid_p, out_p = (_round_up(d, LANE) for d in (in_dim, hid_dim, out_dim))
    w1p = jnp.pad(w1.astype(jnp.bfloat16), ((0, in_p - in_dim), (0, hid_p - hid_dim)))
    w2p = jnp.pad(w2.astype(jnp.bfloat16), ((0, hid_p - hid_dim), (0, out_p - out_dim)))
    b1p = jnp.pad(jnp.asarray(b1, jnp.float32).reshape(1, -1),
                  ((0, 0), (0, hid_p - hid_dim)))
    b2p = jnp.pad(jnp.asarray(b2, jnp.float32).reshape(1, -1),
                  ((0, 0), (0, out_p - out_dim)))
    return {"w1": w1p, "b1": b1p, "w2": w2p, "b2": b2p,
            "dims": (in_dim, hid_dim, out_dim)}


def graph_mlp_forward(x, params, *, out_dtype=None, tm=None, x_buffers=2):
    """x: (N, in_dim) f32/bf16; params from prepare_params().

    out_dtype: defaults to x.dtype; pass jnp.bfloat16 to halve output writeback.
    x_buffers: pipeline depth for the streamed x tiles (3 can help on very
    mem-bound shapes where compute per step doesn't cover the x DMA).
    """
    in_dim, hid_dim, out_dim = params["dims"]
    w1p, b1p, w2p, b2p = params["w1"], params["b1"], params["w2"], params["b2"]
    in_p, hid_p = w1p.shape
    out_p = w2p.shape[1]
    N = x.shape[0]
    assert x.shape == (N, in_dim), (x.shape, (N, in_dim))
    out_dtype = x.dtype if out_dtype is None else jnp.dtype(out_dtype)

    # ---- per-generation VMEM policy: 7/8 of physical capacity
    #      (~112 MiB on v5e/v6e, ~56 MiB on v7x), never a flat 64 MiB clamp.
    cap_limit = max(16 << 20, (_vmem_capacity_bytes() * 7) // 8)

    # ---- row tile: minimize row padding and keep >= 4 grid steps when N
    #      allows (megacore sharding on v7x + enough steps to pipeline).
    if tm is None:
        n_tiles = max(1, math.ceil(N / 512))
        if N >= 4 * SUBLANE:
            n_tiles = max(n_tiles, 4)
        tm = _round_up(math.ceil(N / n_tiles), SUBLANE)
    tm = max(SUBLANE, _round_up(int(tm), SUBLANE))

    # ---- hidden-dim (K) tiling when the resident weights would eat more than
    #      ~1/3 of the VMEM budget.
    res_mult = 1 if _HAS_BUFFERED else 2            # buffers per resident weight
    full_w_bytes = (res_mult * (in_p * hid_p + hid_p * out_p) * 2
                    + res_mult * (hid_p + out_p) * 4)
    tk, nk = hid_p, 1
    if full_w_bytes > cap_limit // 3:
        cand = hid_p
        while cand > LANE:
            nxt = cand // 2
            if nxt % LANE != 0 or hid_p % nxt != 0:
                break                               # keep tk a 128-multiple divisor of hid_p
            chunk = 2 * (in_p * nxt + nxt * out_p) * 2 + 2 * nxt * 4 + out_p * 4
            cand = nxt
            if chunk <= cap_limit // 3:
                break
        tk, nk = cand, hid_p // cand

    x_item = 2 if in_dim != in_p else jnp.dtype(x.dtype).itemsize
    out_item = out_dtype.itemsize
    xbuf = max(2, int(x_buffers))

    def plan_bytes(tm_, w_mult):
        b = xbuf * tm_ * in_p * x_item              # streamed x row tiles
        b += 2 * tm_ * out_p * out_item             # double-buffered out tiles
        if nk == 1:
            b += w_mult * ((in_p * hid_p + hid_p * out_p) * 2 + (hid_p + out_p) * 4)
        else:
            b += 2 * (in_p * tk + tk * out_p) * 2 + 2 * tk * 4 + w_mult * out_p * 4
            b += tm_ * out_p * 4                    # f32 accumulator scratch
        b += tm_ * tk * 4 + tm_ * tk * 2            # f32 hidden + bf16 recast temporaries
        return b + (2 << 20)                        # Mosaic internal headroom

    # Shrink the row tile first if the plan doesn't fit the per-chip budget.
    while plan_bytes(tm, res_mult) > cap_limit and tm > SUBLANE:
        tm = max(SUBLANE, _round_up(tm // 2, SUBLANE))

    n_p = _round_up(N, tm)
    n_rows = n_p // tm

    # ---- x: pad/cast only when actually required; otherwise stream it as-is
    #      and cast to bf16 on-chip (saves an extra HBM read+write pass over x).
    need_pad_x = (in_dim != in_p) or (n_p != N)
    if need_pad_x:
        xk = jnp.pad(x.astype(jnp.bfloat16), ((0, n_p - N), (0, in_p - in_dim)))
    else:
        xk = x

    cost = pl.CostEstimate(                          # padded dims = work actually done
        flops=2 * n_p * (in_p * hid_p + hid_p * out_p),
        transcendentals=0,
        bytes_accessed=int(xk.size * xk.dtype.itemsize
                           + w1p.size * 2 + w2p.size * 2
                           + b1p.size * 4 + b2p.size * 4
                           + n_p * out_p * out_item),
    )

    def run(use_buffered):
        def spec(shape, index_map, buffers=None):
            if use_buffered and buffers is not None and buffers != 2:
                return pl.BlockSpec(shape, index_map, pipeline_mode=pl.Buffered(buffers))
            return pl.BlockSpec(shape, index_map)

        w_mult = 1 if use_buffered else 2
        vmem_limit = int(min(cap_limit, max(plan_bytes(tm, w_mult), 32 << 20)))

        if nk == 1:
            grid_spec = pltpu.PrefetchScalarGridSpec(
                num_scalar_prefetch=0,
                grid=(n_rows,),
                in_specs=[
                    spec((tm, in_p), lambda i: (i, 0), buffers=xbuf),    # x (streamed)
                    spec((in_p, hid_p), lambda i: (0, 0), buffers=1),    # W1 (resident)
                    spec((1, hid_p), lambda i: (0, 0), buffers=1),       # b1 (resident)
                    spec((hid_p, out_p), lambda i: (0, 0), buffers=1),   # W2 (resident)
                    spec((1, out_p), lambda i: (0, 0), buffers=1),       # b2 (resident)
                ],
                out_specs=pl.BlockSpec((tm, out_p), lambda i: (i, 0)),
            )
            kernel = _mlp_kernel
            dims_sem = ("parallel",)
        else:
            grid_spec = pltpu.PrefetchScalarGridSpec(
                num_scalar_prefetch=0,
                grid=(n_rows, nk),
                in_specs=[
                    spec((tm, in_p), lambda i, k: (i, 0), buffers=xbuf),  # x (resident over k)
                    pl.BlockSpec((in_p, tk), lambda i, k: (0, k)),        # W1 k-chunk (streamed)
                    pl.BlockSpec((1, tk), lambda i, k: (0, k)),           # b1 k-chunk
                    pl.BlockSpec((tk, out_p), lambda i, k: (k, 0)),       # W2 k-chunk (streamed)
                    spec((1, out_p), lambda i, k: (0, 0), buffers=1),     # b2 (resident)
                ],
                out_specs=pl.BlockSpec((tm, out_p), lambda i, k: (i, 0)),
                scratch_shapes=[pltpu.VMEM((tm, out_p), jnp.float32)],
            )
            kernel = _mlp_kernel_ktiled
            dims_sem = ("parallel", "arbitrary")

        return pl.pallas_call(
            kernel,
            out_shape=jax.ShapeDtypeStruct((n_p, out_p), out_dtype),
            grid_spec=grid_spec,
            compiler_params=pltpu.CompilerParams(
                dimension_semantics=dims_sem,
                vmem_limit_bytes=vmem_limit,
            ),
            cost_estimate=cost,
        )(xk, w1p, b1p, w2p, b2p)

    if _HAS_BUFFERED:
        try:
            out = run(True)
        except (TypeError, NotImplementedError, pltpu.LoweringException):
            # pipeline_mode=pl.Buffered rejected at lowering on this jax version:
            # rebuild with default double-buffered weights + recomputed VMEM budget.
            out = run(False)
    else:
        out = run(False)

    # strip row / lane padding
    return out[:N, :out_dim]


def init_params(key, in_dim, hid_dim, out_dim):
    # Deterministic init mimicking torch.nn.Linear (uniform(-1/sqrt(fan_in), +)).
    k1, k2, k3, k4 = jax.random.split(key, 4)
    lim1 = 1.0 / (in_dim ** 0.5)
    lim2 = 1.0 / (hid_dim ** 0.5)
    # weights already transposed to (in, out) so the kernel does x @ W
    w1 = jax.random.uniform(k1, (in_dim, hid_dim), jnp.float32, -lim1, lim1)
    b1 = jax.random.uniform(k2, (1, hid_dim), jnp.float32, -lim1, lim1)
    w2 = jax.random.uniform(k3, (hid_dim, out_dim), jnp.float32, -lim2, lim2)
    b2 = jax.random.uniform(k4, (1, out_dim), jnp.float32, -lim2, lim2)
    return w1, b1, w2, b2


if __name__ == "__main__":
    # Small shapes consistent with an MLP over node features (the torch module's
    # debug print of the input size is intentionally omitted).
    N, in_dim, hid_dim, out_dim = 16, 32, 64, 16

    key = jax.random.PRNGKey(0)
    kx, kp = jax.random.split(key)
    x = jax.random.normal(kx, (N, in_dim), jnp.float32)
    w1, b1, w2, b2 = init_params(kp, in_dim, hid_dim, out_dim)

    # one-time weight pad + bf16 cast, reused across forward calls
    params = prepare_params(w1, b1, w2, b2)

    out = graph_mlp_forward(x, params)
    out = jax.block_until_ready(out)
    assert out.shape == (N, out_dim)

    # reference matching the kernel's numerics (bf16 MXU inputs, f32 accumulation)
    h = jnp.maximum(
        jnp.dot(x.astype(jnp.bfloat16), w1.astype(jnp.bfloat16),
                preferred_element_type=jnp.float32) + b1, 0.0)
    ref_bf16 = jnp.dot(h.astype(jnp.bfloat16), w2.astype(jnp.bfloat16),
                       preferred_element_type=jnp.float32) + b2
    assert jnp.allclose(out.astype(jnp.float32), ref_bf16, atol=2e-3, rtol=2e-3), \
        "mismatch vs bf16 reference"

    # loose sanity check against the pure-f32 reference (bf16 quantization tolerance)
    ref_f32 = jnp.maximum(x @ w1 + b1, 0.0) @ w2 + b2
    assert jnp.allclose(out.astype(jnp.float32), ref_f32, atol=5e-2, rtol=5e-2), \
        "mismatch vs f32 reference"

    print("KERNEL_OK")
</pallas_src>

<mosaic_0001>
module attributes {stable_mosaic.version = 11 : i64} {
  func.func @_mlp_kernel(%arg0: i32, %arg1: memref<16x128xbf16, #tpu.memory_space<vmem>>, %arg2: memref<128x128xbf16, #tpu.memory_space<vmem>>, %arg3: memref<1x128xf32, #tpu.memory_space<vmem>>, %arg4: memref<128x128xbf16, #tpu.memory_space<vmem>>, %arg5: memref<1x128xf32, #tpu.memory_space<vmem>>, %arg6: memref<16x128xf32, #tpu.memory_space<vmem>>) attributes {dimension_semantics = [#tpu.dimension_semantics<parallel>], iteration_bounds = array<i64: 1>, scalar_prefetch = 0 : i64, scratch_operands = 0 : i64, tpu.core_type = #tpu.core_type<tc>, window_params = [{transform_indices = @transform_0, window_bounds = array<i64: 16, 128>}, {pipeline_mode = #tpu.pipeline_mode<synchronous>, transform_indices = @transform_1, window_bounds = array<i64: 128, 128>}, {pipeline_mode = #tpu.pipeline_mode<synchronous>, transform_indices = @transform_2, window_bounds = array<i64: 1, 128>}, {pipeline_mode = #tpu.pipeline_mode<synchronous>, transform_indices = @transform_3, window_bounds = array<i64: 128, 128>}, {pipeline_mode = #tpu.pipeline_mode<synchronous>, transform_indices = @transform_4, window_bounds = array<i64: 1, 128>}, {transform_indices = @transform_5, window_bounds = array<i64: 16, 128>}]} {
    %c0 = arith.constant 0 : index
    %c0_0 = arith.constant 0 : index
    %0 = vector.load %arg1[%c0, %c0_0] : memref<16x128xbf16, #tpu.memory_space<vmem>>, vector<16x128xbf16>
    %c0_1 = arith.constant 0 : index
    %c0_2 = arith.constant 0 : index
    %1 = vector.load %arg2[%c0_1, %c0_2] : memref<128x128xbf16, #tpu.memory_space<vmem>>, vector<128x128xbf16>
    %cst = arith.constant dense<0.000000e+00> : vector<16x128xf32>
    %2 = tpu.matmul %0, %1, %cst {dimension_numbers = #tpu.dot_dimension_numbers<[1], [0], [0], [1], [0, 0, 1, 1], [], []>} : vector<16x128xbf16>, vector<128x128xbf16>, vector<16x128xf32> -> vector<16x128xf32>
    %c0_3 = arith.constant 0 : index
    %c0_4 = arith.constant 0 : index
    %3 = vector.load %arg3[%c0_3, %c0_4] : memref<1x128xf32, #tpu.memory_space<vmem>>, vector<1x128xf32>
    %4 = vector.broadcast %3 : vector<1x128xf32> to vector<16x128xf32>
    %5 = arith.addf %2, %4 : vector<16x128xf32>
    %cst_5 = arith.constant 0.000000e+00 : f32
    %6 = vector.broadcast %cst_5 : f32 to vector<16x128xf32>
    %7 = arith.maximumf %5, %6 : vector<16x128xf32>
    %8 = arith.truncf %7 : vector<16x128xf32> to vector<16x128xbf16>
    %c0_6 = arith.constant 0 : index
    %c0_7 = arith.constant 0 : index
    %9 = vector.load %arg4[%c0_6, %c0_7] : memref<128x128xbf16, #tpu.memory_space<vmem>>, vector<128x128xbf16>
    %cst_8 = arith.constant dense<0.000000e+00> : vector<16x128xf32>
    %10 = tpu.matmul %8, %9, %cst_8 {dimension_numbers = #tpu.dot_dimension_numbers<[1], [0], [0], [1], [0, 0, 1, 1], [], []>} : vector<16x128xbf16>, vector<128x128xbf16>, vector<16x128xf32> -> vector<16x128xf32>
    %c0_9 = arith.constant 0 : index
    %c0_10 = arith.constant 0 : index
    %11 = vector.load %arg5[%c0_9, %c0_10] : memref<1x128xf32, #tpu.memory_space<vmem>>, vector<1x128xf32>
    %12 = vector.broadcast %11 : vector<1x128xf32> to vector<16x128xf32>
    %13 = arith.addf %10, %12 : vector<16x128xf32>
    %c0_11 = arith.constant 0 : index
    %c0_12 = arith.constant 0 : index
    %14 = vector.load %arg6[%c0_11, %c0_12] : memref<16x128xf32, #tpu.memory_space<vmem>>, vector<16x128xf32>
    tpu.vector_store %arg6[%c0_11, %c0_12], %13 {strides = array<i32>} : memref<16x128xf32, #tpu.memory_space<vmem>>, vector<16x128xf32>,
    return
  }
  func.func @transform_0(%arg0: i32) -> (i32, i32) {
    %c0_i32 = arith.constant 0 : i32
    %c0_i32_0 = arith.constant 0 : i32
    return %arg0, %c0_i32 : i32, i32
  }
  func.func @transform_1(%arg0: i32) -> (i32, i32) {
    %c0_i32 = arith.constant 0 : i32
    %c0_i32_0 = arith.constant 0 : i32
    %c0_i32_1 = arith.constant 0 : i32
    return %c0_i32, %c0_i32_0 : i32, i32
  }
  func.func @transform_2(%arg0: i32) -> (i32, i32) {
    %c0_i32 = arith.constant 0 : i32
    %c0_i32_0 = arith.constant 0 : i32
    %c0_i32_1 = arith.constant 0 : i32
    return %c0_i32, %c0_i32_0 : i32, i32
  }
  func.func @transform_3(%arg0: i32) -> (i32, i32) {
    %c0_i32 = arith.constant 0 : i32
    %c0_i32_0 = arith.constant 0 : i32
    %c0_i32_1 = arith.constant 0 : i32
    return %c0_i32, %c0_i32_0 : i32, i32
  }
  func.func @transform_4(%arg0: i32) -> (i32, i32) {
    %c0_i32 = arith.constant 0 : i32
    %c0_i32_0 = arith.constant 0 : i32
    %c0_i32_1 = arith.constant 0 : i32
    return %c0_i32, %c0_i32_0 : i32, i32
  }
  func.func @transform_5(%arg0: i32) -> (i32, i32) {
    %c0_i32 = arith.constant 0 : i32
    %c0_i32_0 = arith.constant 0 : i32
    return %arg0, %c0_i32 : i32, i32
  }
}

</mosaic_0001>

<bundles_post_ra>
// kernel: tpu_custom_call.1
= control target key start
LH: loop header
LB: loop body
LE: loop exit
PB: predicated region body
PF: predicated region fallthrough
CT: control target
= control target key end

     0   :  { %10 = vsyncpa [#allocation3], 0  ;;  %s518_s0 = inlined_call_operand.hbm [shape: bf16[16,128], index: 0, kind: input, shape index: {}]   ;;  %s519_s1 = inlined_call_operand.hbm [shape: bf16[128,128], index: 1, kind: input, shape index: {}]   ;;  %s520_s2 = inlined_call_operand.vmem [shape: f32[1,128], index: 2, kind: input, shape index: {}]   ;;  %s521_s3 = inlined_call_operand.hbm [shape: bf16[128,128], index: 3, kind: input, shape index: {}]   ;;  %s522_s4 = inlined_call_operand.vmem [shape: f32[1,128], index: 4, kind: input, shape index: {}]   ;;  %s523_s5 = inlined_call_operand.hbm [shape: f32[16,128], index: 5, kind: output, shape index: {}]  }
   0x1   :  { %11 = vsyncpa [#allocation6], 0 }
   0x2   :  { %12 = vsyncpa [#allocation4], 0  ;;  %s30_s20 = sshll.u32 %s519_s1, 4  ;;  %s462_s21 = smov [#allocation5]   ;;  %s31_s20 = int_to_ptr.hbm [resolvable:$true] %s30_s20 }
   0x3   :  { %s32_s22 = sshll.u32 %s462_s21, 4  ;;  %s17_s25 = sshll.u32 %s518_s0, 4  ;;  %s33_s22 = int_to_ptr.vmem [resolvable:$true] %s32_s22  ;;  %s18_s25 = int_to_ptr.hbm [resolvable:$true] %s17_s25 }
   0x4   :  { %s463_s26 = smov 64   ;;  %s464_s27 = smov 4  }
   0x5   :  { %38 = dma.hbm_to_vmem [thread:$0]  %s31_s20, 1024, %s33_s22, [#allocation6], %s463_s26, %s463_s26, %s464_s27  }
   0x6   :  { %s465_s28 = smov [#allocation2]   ;;  %s45_s7 = sshll.u32 %s521_s3, 4  ;;  %s46_s7 = int_to_ptr.hbm [resolvable:$true] %s45_s7 }
   0x7   :  { %s19_s29 = sshll.u32 %s465_s28, 4  ;;  %s466_s1 = smov [#allocation7]   ;;  %s20_s29 = int_to_ptr.vmem [resolvable:$true] %s19_s29 }
   0x8   :  { %25 = dma.hbm_to_vmem [thread:$0]  %s18_s25, 128, %s20_s29, [#allocation3], %s463_s26, %s463_s26, %s464_s27  }
   0x9   :  { %s47_s8 = sshll.u32 %s466_s1, 4  ;;  %s48_s8 = int_to_ptr.vmem [resolvable:$true] %s47_s8 }
   0xa   :  { %53 = dma.hbm_to_vmem [thread:$0]  %s46_s7, 1024, %s48_s8, [#allocation6], %s463_s26, %s463_s26, %s464_s27  }
   0xb   :  { %456 = dma.done.wait [#allocation3], 128  }
   0xc   :  { %457 = vsyncadd [#allocation3], 4294967168 }
   0xd   :  { %458 = dma.done.wait [#allocation6], 2048  }
   0xe   :  { %459 = vsyncadd [#allocation6], 4294965248  ;;  %v341_v0 = vld [vmem:[#allocation5 + $0x38] sm:$0xff]  ;;  %v340_v1 = vld [vmem:[#allocation5 + $0x30] sm:$0xff]  ;;  %s467_s11 = smov [#allocation8]   ;;  %s468_s15 = smov 128  }
   0xf   :  { %144 = vmatpush.bf16.msra.mxu0 %v341_v0  ;;  %v349_v2 = vld [vmem:[#allocation7 + $0x38] sm:$0xff]  ;;  %v348_v3 = vld [vmem:[#allocation7 + $0x30] sm:$0xff]  ;;  %v339_v4 = vld [vmem:[#allocation5 + $0x28] sm:$0xff]  ;;  %s249_s12 = sshll.u32 %s467_s11, 4  ;;  %s469_s16 = smov 8   ;;  %s250_s12 = int_to_ptr.vmem [resolvable:$true] %s249_s12 }
  0x10   :  { %229 = vmatpush.bf16.msra.mxu1 %v349_v2  ;;  %v347_v5 = vld [vmem:[#allocation7 + $0x28] sm:$0xff]  ;;  %v338_v6 = vld [vmem:[#allocation5 + $0x20] sm:$0xff]  ;;  %v337_v8 = vld [vmem:[#allocation5 + $0x18] sm:$0xff] }
  0x11   :  { %v346_v7 = vld [vmem:[#allocation7 + $0x20] sm:$0xff]  ;;  %v336_v9 = vld [vmem:[#allocation5 + $0x10] sm:$0xff]  ;;  %v335_v10 = vld [vmem:[#allocation5 + $0x8] sm:$0xff] }
  0x12   :  { %v334_v11 = vld [vmem:[#allocation5] sm:$0xff]  ;;  %v333_v12 = vld [vmem:[#allocation2] sm:$0xff]  ;;  %v344_v14 = vld [vmem:[#allocation7 + $0x10] sm:$0xff] }
  0x13   :  { %145 = vmatpush.bf16.msra.mxu0 %v340_v1  ;;  %v345_v13 = vld [vmem:[#allocation7 + $0x18] sm:$0xff]  ;;  %v343_v15 = vld [vmem:[#allocation7 + $0x8] sm:$0xff]  ;;  %v342_v16 = vld [vmem:[#allocation7] sm:$0xff] }
  0x14   :  { %230 = vmatpush.bf16.msra.mxu1 %v348_v3  ;;  %v358_v18 = vld [vmem:[%s520_s2] ss:$0 sm:$0xff]  ;;  %s251_s2 = sshll.u32 %s523_s5, 4  ;;  %s252_s2 = int_to_ptr.hbm [resolvable:$true] %s251_s2 }
  0x15   :  { %v359_v25 = vld [vmem:[%s522_s4] ss:$0 sm:$0xff] }
  0x17   :  { %146 = vmatpush.bf16.msra.mxu0 %v339_v4 }
  0x18   :  { %231 = vmatpush.bf16.msra.mxu1 %v347_v5 }
  0x1b   :  { %147 = vmatpush.bf16.msra.mxu0 %v338_v6 }
  0x1c   :  { %232 = vmatpush.bf16.msra.mxu1 %v346_v7 }
  0x1f   :  { %148 = vmatpush.bf16.msra.mxu0 %v337_v8 }
  0x20   :  { %233 = vmatpush.bf16.msra.mxu1 %v345_v13 }
  0x23   :  { %149 = vmatpush.bf16.msra.mxu0 %v336_v9 }
  0x24   :  { %234 = vmatpush.bf16.msra.mxu1 %v344_v14 }
  0x27   :  { %150 = vmatpush.bf16.msra.mxu0 %v335_v10 }
  0x28   :  { %235 = vmatpush.bf16.msra.mxu1 %v343_v15 }
  0x2b   :  { %151 = vmatpush.bf16.msra.mxu0 %v334_v11 }
  0x2c   :  { %236 = vmatpush.bf16.msra.mxu1 %v342_v16 }
  0x2e   :  { %152 = vmatmul.bf16.vlgmr.msra.gmra.mxu0 %v333_v12 }
  0xab   :  { %v153_v17 = vpop.f32.mrf.mxu0 }
  0xac   :  { %v154_v19 = vadd.f32 %v358_v18, %v153_v17 }
  0xae   :  { %v158_v22 = vmax.f32 %v154_v19, 0.0 }
  0xb3   :  { %v155_v20 = vpop.f32.mrf.mxu0 }
  0xb4   :  { %v156_v21 = vadd.f32 %v358_v18, %v155_v20 }
  0xb6   :  { %v159_v23 = vmax.f32 %v156_v21, 0.0 }
  0xb8   :  { %v160_v24 = vpack.c.bf16 %v159_v23, %v158_v22 }
  0xba   :  { %237 = vmatmul.bf16.vlgmr.msra.gmra.mxu1 %v160_v24 }
 0x137   :  { %v238_v26 = vpop.f32.mrf.mxu1 }
 0x138   :  { %v239_v27 = vadd.f32 %v359_v25, %v238_v26 }
 0x13a   :  { %243 = vst [vmem:[#allocation8] sm:$0xff] %v239_v27 }
 0x13f   :  { %v240_v28 = vpop.f32.mrf.mxu1 }
 0x140   :  { %v241_v29 = vadd.f32 %v359_v25, %v240_v28 }
 0x142   :  { %244 = vst [vmem:[#allocation8 + $0x8] sm:$0xff] %v241_v29 }
 0x143   :  { %257 = dma.vmem_to_hbm [thread:$0]  %s250_s12, 256, %s252_s2, [#allocation4], %s468_s15, %s468_s15, %s469_s16  }
 0x144   :  { %460 = dma.done.wait [#allocation4], 256  }
 0x145   :  { %461 = vsyncadd [#allocation4], 4294967040 }
 0x146   :  { %262 = vsyncpa [#allocation3], 1 }
 0x147   :  { %263 = vsyncpa [#allocation6], 1 }
 0x148   :  { %264 = vsyncpa [#allocation4], 1 }

</bundles_post_ra>
